<compile_context>
chip_gen: v7x
topology: tpu7x:2x2x1
jax: 0.10.0
libtpu: 0.0.40
codegen_flags: <defaults>
</compile_context>

<pallas_src>
import functools
import numpy as np
import jax
import jax.numpy as jnp
from jax.experimental import pallas as pl
from jax.experimental.pallas import tpu as pltpu

# ----------------------- DetectorContext stand-in ---------------------------
NUM_ANCHORS = 2
NUM_CLASSES = 4
LAMBDA_OBJ = 5.0
LAMBDA_PRIOR = 0.01
LAMBDA_COORD = 1.0
IOU_THRESHOLD = 0.6
EPSILON = 1e-5
SEEN_THRESHOLD = 12800

# Deterministic anchors (w, h) in fraction-of-image units (PriorBox stand-in).
ANCHORS = np.array([[0.15, 0.20], [0.40, 0.55]], dtype=np.float32)  # (A, 2)


def _round_up(x, m):
    return ((x + m - 1) // m) * m


# ------------------------------ Pallas kernel -------------------------------
def _make_loss_kernel(num_anchors, num_classes, m_tile, l_tile,
                      m_valid, l_valid, mask_rows, mask_lanes,
                      inv_gx, inv_gy):
    A, NC = num_anchors, num_classes
    f32 = jnp.float32

    def _sigmoid(v):
        # sigmoid(x) == 0.5 * (1 + tanh(x/2)): exactly one EUP op per element.
        return 0.5 * (jnp.tanh(0.5 * v) + 1.0)

    def kernel(seen_ref, pred_ref, tgt_ref, anch_ref, out_ref):
        # pred_ref/tgt_ref: (5+NC, m_tile, l_tile) channel-major VMEM tiles.
        # anch_ref: (A, 2) f32 in SMEM.  seen_ref: (1,) i32 scalar prefetch.
        i = pl.program_id(0)          # row-tile index (row = b * A + a)

        def p(c):                     # storage dtype -> f32 upcast point
            return pred_ref[c].astype(f32)

        def t(c):
            return tgt_ref[c].astype(f32)

        # ---- per-row anchor (w, h) from the tiny SMEM table (hoisted) ------
        row_col = jax.lax.broadcasted_iota(jnp.int32, (m_tile, 1), 0) + i * m_tile
        a_idx = row_col % A
        anch_w = jnp.zeros((m_tile, 1), f32)
        anch_h = jnp.zeros((m_tile, 1), f32)
        for a in range(A):            # static tiny loop, pure VPU selects
            sel = a_idx == a
            anch_w = jnp.where(sel, anch_ref[a, 0], anch_w)
            anch_h = jnp.where(sel, anch_ref[a, 1], anch_h)

        # ---- validity mask: only built when padding exists (static gate) ---
        mask = None
        if mask_lanes:
            cols = jax.lax.broadcasted_iota(jnp.int32, (m_tile, l_tile), 1)
            mask = cols < l_valid
        if mask_rows:
            rows = jax.lax.broadcasted_iota(jnp.int32, (m_tile, l_tile), 0) + i * m_tile
            rmask = rows < m_valid
            mask = rmask if mask is None else jnp.logical_and(mask, rmask)

        def masked_sum(v):
            if mask is None:
                return jnp.sum(v)
            return jnp.sum(jnp.where(mask, v, 0.0))

        # ---- box decode (matches the torch module's in-place transform) ----
        x = _sigmoid(p(0))
        y = _sigmoid(p(1))
        w = jnp.exp(p(2)) * anch_w
        h = jnp.exp(p(3)) * anch_h
        obj = _sigmoid(p(4))

        gx, gy, gw, gh, gobj = t(0), t(1), t(2), t(3), t(4)

        # ---- elementwise IoU (cxcywh) ---------------------------------------
        iw = jnp.maximum(jnp.minimum(x + 0.5 * w, gx + 0.5 * gw)
                         - jnp.maximum(x - 0.5 * w, gx - 0.5 * gw), 0.0)
        ih = jnp.maximum(jnp.minimum(y + 0.5 * h, gy + 0.5 * gh)
                         - jnp.maximum(y - 0.5 * h, gy - 0.5 * gh), 0.0)
        inter = iw * ih
        union = w * h + gw * gh - inter
        # TODO(synk): torchlake's exact IOU() epsilon convention is unpublished;
        # we use inter / (union + epsilon).
        iou = inter / (union + EPSILON)

        pos = (gobj > 0).astype(f32)
        noobj = (iou < IOU_THRESHOLD).astype(f32)

        # ---- single fused squared-error accumulator -------------------------
        # no-object loss (weight 1): (noobject_indicator * obj)^2
        se = (noobj * obj) ** 2
        # objectness loss: pos in {0,1} -> (pos*obj - pos*iou)^2 == pos*(obj-iou)^2
        se = se + LAMBDA_OBJ * (pos * (obj - iou) ** 2)
        # coordinate loss: exact (pos*pred - tgt)^2 form as in the reference
        se = se + LAMBDA_COORD * ((pos * x - gx) ** 2 + (pos * y - gy) ** 2
                                  + (pos * w - gw) ** 2 + (pos * h - gh) ** 2)
        # class loss: softmax over classes of pos-masked logits, elementwise
        # across the NC per-class slabs (no cross-sublane work)
        cls_m = [pos * p(5 + c) for c in range(NC)]
        mx = cls_m[0]
        for c in range(1, NC):
            mx = jnp.maximum(mx, cls_m[c])
        ex = [jnp.exp(v - mx) for v in cls_m]
        den = ex[0]
        for c in range(1, NC):
            den = den + ex[c]
        inv_den = 1.0 / den
        for c in range(NC):
            se = se + (ex[c] * inv_den - t(5 + c)) ** 2

        partial = masked_sum(se)        # the one base reduction per tile

        # lane-dense (8,128) output block; this tile's partial sits at [0,0].
        orow = jax.lax.broadcasted_iota(jnp.int32, (8, 128), 0)
        ocol = jax.lax.broadcasted_iota(jnp.int32, (8, 128), 1)
        at00 = jnp.logical_and(orow == 0, ocol == 0)
        out_ref[...] = jnp.where(at00, partial, 0.0)

        # ---- prior (anchor-shape) loss: only while seen < 12800 -------------
        @pl.when(seen_ref[0] < SEEN_THRESHOLD)
        def _():
            neg = 1.0 - pos
            prior_se = neg * ((x - inv_gx) ** 2 + (y - inv_gy) ** 2
                              + (w - anch_w) ** 2 + (h - anch_h) ** 2)
            prior_partial = LAMBDA_PRIOR * masked_sum(prior_se)
            out_ref[...] = out_ref[...] + jnp.where(at00, prior_partial, 0.0)

    return kernel


# ------------------------------- wrapper -------------------------------------
@functools.partial(jax.jit, static_argnames=("storage_dtype",))
def yolov2_loss(prediction_nchw, target_kmhw, anchors, seen,
                storage_dtype=jnp.bfloat16):
    """prediction_nchw: (B, A*(5+C), H, W) raw logits.
    target_kmhw: channel-major (5+C, B*A, H*W) target from match_np."""
    B, C, H, W = prediction_nchw.shape
    A = NUM_ANCHORS
    K = C // A                       # 5 + num_classes
    NC = K - 5
    HW = H * W
    M = B * A
    itemsize = np.dtype(storage_dtype).itemsize

    # ---- byte-budget tile picker: full-lane tiles, ~4 MiB per input block ---
    L_pad = _round_up(HW, 128)
    bytes_per_row = 2 * K * L_pad * itemsize            # pred + tgt, one row
    budget = 8 * 1024 * 1024                            # per grid step (both inputs)
    rows_from_budget = max(8, (budget // bytes_per_row) // 8 * 8)
    M0 = _round_up(M, 8)
    rows_for_parallel = _round_up(max(1, -(-M0 // 4)), 8)   # aim for >= 4 steps
    M_tile = int(max(8, min(rows_from_budget, rows_for_parallel)))
    M_pad = _round_up(M0, M_tile)
    G_m = M_pad // M_tile

    # ---- cast to storage dtype BEFORE the (fused) re-layout / pad -----------
    pred = prediction_nchw.astype(storage_dtype).reshape(B, A, K, HW)
    # TODO(synk): pred still needs one channel-major transpose pass here; emit
    # it channel-major upstream of the loss to remove the last extra HBM pass.
    pred = jnp.transpose(pred, (2, 0, 1, 3)).reshape(K, M, HW)
    pred = jnp.pad(pred, ((0, 0), (0, M_pad - M), (0, L_pad - HW)))
    tgt = jnp.asarray(target_kmhw).astype(storage_dtype)
    tgt = jnp.pad(tgt, ((0, 0), (0, M_pad - M), (0, L_pad - HW)))

    seen_arr = jnp.asarray(seen, dtype=jnp.int32).reshape(1)
    anch = jnp.asarray(anchors, dtype=jnp.float32).reshape(A, 2)

    kernel = _make_loss_kernel(
        A, NC, M_tile, L_pad, M, HW,
        mask_rows=(M_pad > M), mask_lanes=(L_pad > HW),
        inv_gx=0.5 / W, inv_gy=0.5 / H)

    partials = pl.pallas_call(
        kernel,
        out_shape=jax.ShapeDtypeStruct((G_m * 8, 128), jnp.float32),
        grid_spec=pltpu.PrefetchScalarGridSpec(
            num_scalar_prefetch=1,
            grid=(G_m,),
            in_specs=[
                pl.BlockSpec((K, M_tile, L_pad), lambda i, seen: (0, i, 0)),
                pl.BlockSpec((K, M_tile, L_pad), lambda i, seen: (0, i, 0)),
                pl.BlockSpec(memory_space=pltpu.MemorySpace.SMEM),   # anchors
            ],
            out_specs=pl.BlockSpec((8, 128), lambda i, seen: (i, 0)),
        ),
        compiler_params=pltpu.CompilerParams(
            dimension_semantics=("parallel",),
            vmem_limit_bytes=48 * 1024 * 1024),
    )(seen_arr, pred, tgt, anch)

    return jnp.sum(partials)


# ------------------ GT -> anchor matching (host-side glue) -------------------
def _generate_grid_train(grid_x, grid_y, center=True):
    xs = (np.arange(grid_x, dtype=np.float32) + (0.5 if center else 0.0)) / grid_x
    ys = (np.arange(grid_y, dtype=np.float32) + (0.5 if center else 0.0)) / grid_y
    gx, gy = np.meshgrid(xs, ys)
    return np.stack([gx, gy], axis=0).reshape(1, 1, 2, grid_y, grid_x)


def _cxcywh_to_xyxy(b):
    cx, cy, w, h = b[:, 0], b[:, 1], b[:, 2], b[:, 3]
    return np.stack([cx - w / 2, cy - h / 2, cx + w / 2, cy + h / 2], axis=1)


def _box_iou_np(a, b):
    area_a = (a[:, 2] - a[:, 0]) * (a[:, 3] - a[:, 1])
    area_b = (b[:, 2] - b[:, 0]) * (b[:, 3] - b[:, 1])
    lt = np.maximum(a[:, None, :2], b[None, :, :2])
    rb = np.minimum(a[:, None, 2:], b[None, :, 2:])
    wh = np.clip(rb - lt, 0.0, None)
    inter = wh[..., 0] * wh[..., 1]
    union = area_a[:, None] + area_b[None, :] - inter
    return inter / np.maximum(union, 1e-12)


def match_np(groundtruth, grid_x, grid_y, anchors, num_anchors, num_classes,
             iou_threshold):
    """Returns the matched target directly in channel-major (5+C, B*A, H*W)."""
    grids = np.repeat(_generate_grid_train(grid_x, grid_y, center=True),
                      num_anchors, axis=1)                           # (1,A,2,H,W)
    anch_rep = np.tile(anchors.reshape(1, num_anchors, 2, 1, 1),
                       (1, 1, 1, grid_y, grid_x))                    # (1,A,2,H,W)
    default_boxes = np.concatenate([grids, anch_rep], axis=2)        # (1,A,4,H,W)
    default_boxes = (default_boxes.reshape(1, num_anchors, 4, -1)
                     .transpose(0, 1, 3, 2).reshape(-1, 4))          # (A*H*W, 4)

    batch_size = len(groundtruth)
    target = np.zeros((batch_size, num_anchors * grid_y * grid_x, 5),
                      dtype=np.float32)
    for bi, gt in enumerate(groundtruth):
        gt = np.asarray(gt, dtype=np.float32)
        if gt.ndim != 2:
            gt = gt[None, :]
        overlaps = _box_iou_np(_cxcywh_to_xyxy(gt[:, :4]),
                               _cxcywh_to_xyxy(default_boxes))       # (N, P)
        best_gt_overlap = overlaps.max(axis=0)
        best_gt_idx = overlaps.argmax(axis=0)
        over = best_gt_overlap > iou_threshold
        target[bi, over] = gt[best_gt_idx[over]]
        best_prior_idx = overlaps.argmax(axis=1)
        target[bi, best_prior_idx] = gt

    onehot = np.eye(num_classes, dtype=np.float32)[target[:, :, 4].astype(np.int64)]
    target = np.concatenate([target, onehot], axis=2)                # (B, A*HW, K)
    K = 5 + num_classes
    HW = grid_y * grid_x
    target = (target.reshape(batch_size, num_anchors, HW, K)
              .transpose(3, 0, 1, 2)
              .reshape(K, batch_size * num_anchors, HW))             # (K, B*A, HW)
    return target


# ----------------------------------- main ------------------------------------
if __name__ == "__main__":
    key = jax.random.PRNGKey(0)
    B, H, W = 2, 8, 8
    A, NC = NUM_ANCHORS, NUM_CLASSES
    C = A * (5 + NC)

    prediction = jax.random.normal(key, (B, C, H, W), dtype=jnp.float32) * 0.5

    # deterministic ground-truth: per-image lists of [cx, cy, w, h, class]
    groundtruth = [
        [[0.30, 0.40, 0.20, 0.25, 1.0], [0.70, 0.60, 0.35, 0.50, 3.0]],
        [[0.55, 0.25, 0.15, 0.20, 2.0]],
    ]
    target = jnp.asarray(
        match_np(groundtruth, W, H, ANCHORS, A, NC, IOU_THRESHOLD))

    seen = 1000  # < 12800 -> prior loss branch is active
    loss = yolov2_loss(prediction, target, jnp.asarray(ANCHORS), seen)
    jax.block_until_ready(loss)
    assert np.isfinite(float(loss))
    print("KERNEL_OK")
</pallas_src>

<mosaic_0001>
module attributes {stable_mosaic.version = 11 : i64} {
  func.func @kernel(%arg0: i32, %arg1: memref<1xi32, #tpu.memory_space<smem>>, %arg2: memref<9x8x128xbf16, #tpu.memory_space<vmem>>, %arg3: memref<9x8x128xbf16, #tpu.memory_space<vmem>>, %arg4: memref<2x2xf32, #tpu.memory_space<smem>>, %arg5: memref<8x128xf32, #tpu.memory_space<vmem>>) attributes {dimension_semantics = [#tpu.dimension_semantics<parallel>], iteration_bounds = array<i64: 1>, scalar_prefetch = 1 : i64, scratch_operands = 0 : i64, tpu.core_type = #tpu.core_type<tc>, window_params = [{transform_indices = @transform_0, window_bounds = array<i64: 9, 8, 128>}, {transform_indices = @transform_1, window_bounds = array<i64: 9, 8, 128>}, {transform_indices = @transform_2, window_bounds = array<i64: 2, 2>}, {transform_indices = @transform_3, window_bounds = array<i64: 8, 128>}]} {
    %0 = tpu.iota {dimensions = array<i32: 0>} : vector<8x1xi32>
    %c8_i32 = arith.constant 8 : i32
    %1 = arith.muli %arg0, %c8_i32 : i32
    %2 = vector.broadcast %1 : i32 to vector<8x1xi32>
    %3 = arith.addi %0, %2 : vector<8x1xi32>
    %c2_i32 = arith.constant 2 : i32
    %c0_i32 = arith.constant 0 : i32
    %4 = arith.cmpi eq, %c2_i32, %c0_i32 : i32
    %c1_i32 = arith.constant 1 : i32
    %5 = arith.select %4, %c1_i32, %c2_i32 : i32
    %6 = vector.broadcast %5 : i32 to vector<8x1xi32>
    %7 = arith.remsi %3, %6 : vector<8x1xi32>
    %c0_i32_0 = arith.constant 0 : i32
    %8 = vector.broadcast %c0_i32_0 : i32 to vector<8x1xi32>
    %9 = arith.cmpi ne, %7, %8 : vector<8x1xi32>
    %c0_i32_1 = arith.constant 0 : i32
    %10 = vector.broadcast %c0_i32_1 : i32 to vector<8x1xi32>
    %11 = arith.cmpi slt, %7, %10 : vector<8x1xi32>
    %c0_i32_2 = arith.constant 0 : i32
    %12 = arith.cmpi slt, %5, %c0_i32_2 : i32
    %13 = vector.broadcast %12 : i1 to vector<8x1xi1>
    %14 = vector.broadcast %13 : vector<8x1xi1> to vector<8x1xi1>
    %15 = arith.xori %11, %14 : vector<8x1xi1>
    %16 = arith.andi %15, %9 : vector<8x1xi1>
    %17 = vector.broadcast %5 : i32 to vector<8x1xi32>
    %18 = arith.addi %7, %17 : vector<8x1xi32>
    %19 = arith.select %16, %18, %7 : vector<8x1xi1>, vector<8x1xi32>
    %cst = arith.constant 0.000000e+00 : f32
    %20 = vector.broadcast %cst : f32 to vector<8x1xf32>
    %cst_3 = arith.constant 0.000000e+00 : f32
    %21 = vector.broadcast %cst_3 : f32 to vector<8x1xf32>
    %c0_i32_4 = arith.constant 0 : i32
    %22 = vector.broadcast %c0_i32_4 : i32 to vector<8x1xi32>
    %23 = arith.cmpi eq, %19, %22 : vector<8x1xi32>
    %c0 = arith.constant 0 : index
    %c0_5 = arith.constant 0 : index
    %24 = memref.load %arg4[%c0, %c0_5] : memref<2x2xf32, #tpu.memory_space<smem>>
    %25 = vector.broadcast %24 : f32 to vector<8x1xf32>
    %26 = arith.select %23, %25, %20 : vector<8x1xi1>, vector<8x1xf32>
    %c0_6 = arith.constant 0 : index
    %c1 = arith.constant 1 : index
    %27 = memref.load %arg4[%c0_6, %c1] : memref<2x2xf32, #tpu.memory_space<smem>>
    %28 = vector.broadcast %27 : f32 to vector<8x1xf32>
    %29 = arith.select %23, %28, %21 : vector<8x1xi1>, vector<8x1xf32>
    %c1_i32_7 = arith.constant 1 : i32
    %30 = vector.broadcast %c1_i32_7 : i32 to vector<8x1xi32>
    %31 = arith.cmpi eq, %19, %30 : vector<8x1xi32>
    %c1_8 = arith.constant 1 : index
    %c0_9 = arith.constant 0 : index
    %32 = memref.load %arg4[%c1_8, %c0_9] : memref<2x2xf32, #tpu.memory_space<smem>>
    %33 = vector.broadcast %32 : f32 to vector<8x1xf32>
    %34 = arith.select %31, %33, %26 : vector<8x1xi1>, vector<8x1xf32>
    %c1_10 = arith.constant 1 : index
    %c1_11 = arith.constant 1 : index
    %35 = memref.load %arg4[%c1_10, %c1_11] : memref<2x2xf32, #tpu.memory_space<smem>>
    %36 = vector.broadcast %35 : f32 to vector<8x1xf32>
    %37 = arith.select %31, %36, %29 : vector<8x1xi1>, vector<8x1xf32>
    %38 = tpu.iota {dimensions = array<i32: 1>} : vector<8x128xi32>
    %c64_i32 = arith.constant 64 : i32
    %39 = vector.broadcast %c64_i32 : i32 to vector<8x128xi32>
    %40 = arith.cmpi slt, %38, %39 : vector<8x128xi32>
    %41 = tpu.iota {dimensions = array<i32: 0>} : vector<8x128xi32>
    %c8_i32_12 = arith.constant 8 : i32
    %42 = arith.muli %arg0, %c8_i32_12 : i32
    %43 = vector.broadcast %42 : i32 to vector<8x128xi32>
    %44 = arith.addi %41, %43 : vector<8x128xi32>
    %c4_i32 = arith.constant 4 : i32
    %45 = vector.broadcast %c4_i32 : i32 to vector<8x128xi32>
    %46 = arith.cmpi slt, %44, %45 : vector<8x128xi32>
    %47 = arith.andi %40, %46 : vector<8x128xi1>
    %c0_13 = arith.constant 0 : index
    %c0_14 = arith.constant 0 : index
    %c0_15 = arith.constant 0 : index
    %48 = vector.load %arg2[%c0_13, %c0_14, %c0_15] : memref<9x8x128xbf16, #tpu.memory_space<vmem>>, vector<1x8x128xbf16>
    %49 = vector.shape_cast %48 : vector<1x8x128xbf16> to vector<8x128xbf16>
    %50 = arith.extf %49 : vector<8x128xbf16> to vector<8x128xf32>
    %cst_16 = arith.constant 5.000000e-01 : f32
    %51 = vector.broadcast %cst_16 : f32 to vector<8x128xf32>
    %52 = arith.mulf %51, %50 : vector<8x128xf32>
    %53 = math.tanh %52 : vector<8x128xf32>
    %cst_17 = arith.constant 1.000000e+00 : f32
    %54 = vector.broadcast %cst_17 : f32 to vector<8x128xf32>
    %55 = arith.addf %53, %54 : vector<8x128xf32>
    %cst_18 = arith.constant 5.000000e-01 : f32
    %56 = vector.broadcast %cst_18 : f32 to vector<8x128xf32>
    %57 = arith.mulf %56, %55 : vector<8x128xf32>
    %c1_19 = arith.constant 1 : index
    %c0_20 = arith.constant 0 : index
    %c0_21 = arith.constant 0 : index
    %58 = vector.load %arg2[%c1_19, %c0_20, %c0_21] : memref<9x8x128xbf16, #tpu.memory_space<vmem>>, vector<1x8x128xbf16>
    %59 = vector.shape_cast %58 : vector<1x8x128xbf16> to vector<8x128xbf16>
    %60 = arith.extf %59 : vector<8x128xbf16> to vector<8x128xf32>
    %cst_22 = arith.constant 5.000000e-01 : f32
    %61 = vector.broadcast %cst_22 : f32 to vector<8x128xf32>
    %62 = arith.mulf %61, %60 : vector<8x128xf32>
    %63 = math.tanh %62 : vector<8x128xf32>
    %cst_23 = arith.constant 1.000000e+00 : f32
    %64 = vector.broadcast %cst_23 : f32 to vector<8x128xf32>
    %65 = arith.addf %63, %64 : vector<8x128xf32>
    %cst_24 = arith.constant 5.000000e-01 : f32
    %66 = vector.broadcast %cst_24 : f32 to vector<8x128xf32>
    %67 = arith.mulf %66, %65 : vector<8x128xf32>
    %c2 = arith.constant 2 : index
    %c0_25 = arith.constant 0 : index
    %c0_26 = arith.constant 0 : index
    %68 = vector.load %arg2[%c2, %c0_25, %c0_26] : memref<9x8x128xbf16, #tpu.memory_space<vmem>>, vector<1x8x128xbf16>
    %69 = vector.shape_cast %68 : vector<1x8x128xbf16> to vector<8x128xbf16>
    %70 = arith.extf %69 : vector<8x128xbf16> to vector<8x128xf32>
    %71 = math.exp %70 : vector<8x128xf32>
    %72 = vector.broadcast %34 : vector<8x1xf32> to vector<8x128xf32>
    %73 = arith.mulf %71, %72 : vector<8x128xf32>
    %c3 = arith.constant 3 : index
    %c0_27 = arith.constant 0 : index
    %c0_28 = arith.constant 0 : index
    %74 = vector.load %arg2[%c3, %c0_27, %c0_28] : memref<9x8x128xbf16, #tpu.memory_space<vmem>>, vector<1x8x128xbf16>
    %75 = vector.shape_cast %74 : vector<1x8x128xbf16> to vector<8x128xbf16>
    %76 = arith.extf %75 : vector<8x128xbf16> to vector<8x128xf32>
    %77 = math.exp %76 : vector<8x128xf32>
    %78 = vector.broadcast %37 : vector<8x1xf32> to vector<8x128xf32>
    %79 = arith.mulf %77, %78 : vector<8x128xf32>
    %c4 = arith.constant 4 : index
    %c0_29 = arith.constant 0 : index
    %c0_30 = arith.constant 0 : index
    %80 = vector.load %arg2[%c4, %c0_29, %c0_30] : memref<9x8x128xbf16, #tpu.memory_space<vmem>>, vector<1x8x128xbf16>
    %81 = vector.shape_cast %80 : vector<1x8x128xbf16> to vector<8x128xbf16>
    %82 = arith.extf %81 : vector<8x128xbf16> to vector<8x128xf32>
    %cst_31 = arith.constant 5.000000e-01 : f32
    %83 = vector.broadcast %cst_31 : f32 to vector<8x128xf32>
    %84 = arith.mulf %83, %82 : vector<8x128xf32>
    %85 = math.tanh %84 : vector<8x128xf32>
    %cst_32 = arith.constant 1.000000e+00 : f32
    %86 = vector.broadcast %cst_32 : f32 to vector<8x128xf32>
    %87 = arith.addf %85, %86 : vector<8x128xf32>
    %cst_33 = arith.constant 5.000000e-01 : f32
    %88 = vector.broadcast %cst_33 : f32 to vector<8x128xf32>
    %89 = arith.mulf %88, %87 : vector<8x128xf32>
    %c0_34 = arith.constant 0 : index
    %c0_35 = arith.constant 0 : index
    %c0_36 = arith.constant 0 : index
    %90 = vector.load %arg3[%c0_34, %c0_35, %c0_36] : memref<9x8x128xbf16, #tpu.memory_space<vmem>>, vector<1x8x128xbf16>
    %91 = vector.shape_cast %90 : vector<1x8x128xbf16> to vector<8x128xbf16>
    %92 = arith.extf %91 : vector<8x128xbf16> to vector<8x128xf32>
    %c1_37 = arith.constant 1 : index
    %c0_38 = arith.constant 0 : index
    %c0_39 = arith.constant 0 : index
    %93 = vector.load %arg3[%c1_37, %c0_38, %c0_39] : memref<9x8x128xbf16, #tpu.memory_space<vmem>>, vector<1x8x128xbf16>
    %94 = vector.shape_cast %93 : vector<1x8x128xbf16> to vector<8x128xbf16>
    %95 = arith.extf %94 : vector<8x128xbf16> to vector<8x128xf32>
    %c2_40 = arith.constant 2 : index
    %c0_41 = arith.constant 0 : index
    %c0_42 = arith.constant 0 : index
    %96 = vector.load %arg3[%c2_40, %c0_41, %c0_42] : memref<9x8x128xbf16, #tpu.memory_space<vmem>>, vector<1x8x128xbf16>
    %97 = vector.shape_cast %96 : vector<1x8x128xbf16> to vector<8x128xbf16>
    %98 = arith.extf %97 : vector<8x128xbf16> to vector<8x128xf32>
    %c3_43 = arith.constant 3 : index
    %c0_44 = arith.constant 0 : index
    %c0_45 = arith.constant 0 : index
    %99 = vector.load %arg3[%c3_43, %c0_44, %c0_45] : memref<9x8x128xbf16, #tpu.memory_space<vmem>>, vector<1x8x128xbf16>
    %100 = vector.shape_cast %99 : vector<1x8x128xbf16> to vector<8x128xbf16>
    %101 = arith.extf %100 : vector<8x128xbf16> to vector<8x128xf32>
    %c4_46 = arith.constant 4 : index
    %c0_47 = arith.constant 0 : index
    %c0_48 = arith.constant 0 : index
    %102 = vector.load %arg3[%c4_46, %c0_47, %c0_48] : memref<9x8x128xbf16, #tpu.memory_space<vmem>>, vector<1x8x128xbf16>
    %103 = vector.shape_cast %102 : vector<1x8x128xbf16> to vector<8x128xbf16>
    %104 = arith.extf %103 : vector<8x128xbf16> to vector<8x128xf32>
    %cst_49 = arith.constant 5.000000e-01 : f32
    %105 = vector.broadcast %cst_49 : f32 to vector<8x128xf32>
    %106 = arith.mulf %105, %73 : vector<8x128xf32>
    %107 = arith.addf %57, %106 : vector<8x128xf32>
    %cst_50 = arith.constant 5.000000e-01 : f32
    %108 = vector.broadcast %cst_50 : f32 to vector<8x128xf32>
    %109 = arith.mulf %108, %98 : vector<8x128xf32>
    %110 = arith.addf %92, %109 : vector<8x128xf32>
    %111 = arith.minimumf %107, %110 : vector<8x128xf32>
    %cst_51 = arith.constant 5.000000e-01 : f32
    %112 = vector.broadcast %cst_51 : f32 to vector<8x128xf32>
    %113 = arith.mulf %112, %73 : vector<8x128xf32>
    %114 = arith.subf %57, %113 : vector<8x128xf32>
    %cst_52 = arith.constant 5.000000e-01 : f32
    %115 = vector.broadcast %cst_52 : f32 to vector<8x128xf32>
    %116 = arith.mulf %115, %98 : vector<8x128xf32>
    %117 = arith.subf %92, %116 : vector<8x128xf32>
    %118 = arith.maximumf %114, %117 : vector<8x128xf32>
    %119 = arith.subf %111, %118 : vector<8x128xf32>
    %cst_53 = arith.constant 0.000000e+00 : f32
    %120 = vector.broadcast %cst_53 : f32 to vector<8x128xf32>
    %121 = arith.maximumf %119, %120 : vector<8x128xf32>
    %cst_54 = arith.constant 5.000000e-01 : f32
    %122 = vector.broadcast %cst_54 : f32 to vector<8x128xf32>
    %123 = arith.mulf %122, %79 : vector<8x128xf32>
    %124 = arith.addf %67, %123 : vector<8x128xf32>
    %cst_55 = arith.constant 5.000000e-01 : f32
    %125 = vector.broadcast %cst_55 : f32 to vector<8x128xf32>
    %126 = arith.mulf %125, %101 : vector<8x128xf32>
    %127 = arith.addf %95, %126 : vector<8x128xf32>
    %128 = arith.minimumf %124, %127 : vector<8x128xf32>
    %cst_56 = arith.constant 5.000000e-01 : f32
    %129 = vector.broadcast %cst_56 : f32 to vector<8x128xf32>
    %130 = arith.mulf %129, %79 : vector<8x128xf32>
    %131 = arith.subf %67, %130 : vector<8x128xf32>
    %cst_57 = arith.constant 5.000000e-01 : f32
    %132 = vector.broadcast %cst_57 : f32 to vector<8x128xf32>
    %133 = arith.mulf %132, %101 : vector<8x128xf32>
    %134 = arith.subf %95, %133 : vector<8x128xf32>
    %135 = arith.maximumf %131, %134 : vector<8x128xf32>
    %136 = arith.subf %128, %135 : vector<8x128xf32>
    %cst_58 = arith.constant 0.000000e+00 : f32
    %137 = vector.broadcast %cst_58 : f32 to vector<8x128xf32>
    %138 = arith.maximumf %136, %137 : vector<8x128xf32>
    %139 = arith.mulf %121, %138 : vector<8x128xf32>
    %140 = arith.mulf %73, %79 : vector<8x128xf32>
    %141 = arith.mulf %98, %101 : vector<8x128xf32>
    %142 = arith.addf %140, %141 : vector<8x128xf32>
    %143 = arith.subf %142, %139 : vector<8x128xf32>
    %cst_59 = arith.constant 9.99999974E-6 : f32
    %144 = vector.broadcast %cst_59 : f32 to vector<8x128xf32>
    %145 = arith.addf %143, %144 : vector<8x128xf32>
    %146 = arith.divf %139, %145 : vector<8x128xf32>
    %cst_60 = arith.constant 0.000000e+00 : f32
    %147 = vector.broadcast %cst_60 : f32 to vector<8x128xf32>
    %148 = arith.cmpf ogt, %104, %147 : vector<8x128xf32>
    %149 = arith.extui %148 : vector<8x128xi1> to vector<8x128xi32>
    %150 = arith.sitofp %149 : vector<8x128xi32> to vector<8x128xf32>
    %cst_61 = arith.constant 6.000000e-01 : f32
    %151 = vector.broadcast %cst_61 : f32 to vector<8x128xf32>
    %152 = arith.cmpf olt, %146, %151 : vector<8x128xf32>
    %153 = arith.extui %152 : vector<8x128xi1> to vector<8x128xi32>
    %154 = arith.sitofp %153 : vector<8x128xi32> to vector<8x128xf32>
    %155 = arith.mulf %154, %89 : vector<8x128xf32>
    %156 = arith.mulf %155, %155 : vector<8x128xf32>
    %157 = arith.subf %89, %146 : vector<8x128xf32>
    %158 = arith.mulf %157, %157 : vector<8x128xf32>
    %159 = arith.mulf %150, %158 : vector<8x128xf32>
    %cst_62 = arith.constant 5.000000e+00 : f32
    %160 = vector.broadcast %cst_62 : f32 to vector<8x128xf32>
    %161 = arith.mulf %160, %159 : vector<8x128xf32>
    %162 = arith.addf %156, %161 : vector<8x128xf32>
    %163 = arith.mulf %150, %57 : vector<8x128xf32>
    %164 = arith.subf %163, %92 : vector<8x128xf32>
    %165 = arith.mulf %164, %164 : vector<8x128xf32>
    %166 = arith.mulf %150, %67 : vector<8x128xf32>
    %167 = arith.subf %166, %95 : vector<8x128xf32>
    %168 = arith.mulf %167, %167 : vector<8x128xf32>
    %169 = arith.addf %165, %168 : vector<8x128xf32>
    %170 = arith.mulf %150, %73 : vector<8x128xf32>
    %171 = arith.subf %170, %98 : vector<8x128xf32>
    %172 = arith.mulf %171, %171 : vector<8x128xf32>
    %173 = arith.addf %169, %172 : vector<8x128xf32>
    %174 = arith.mulf %150, %79 : vector<8x128xf32>
    %175 = arith.subf %174, %101 : vector<8x128xf32>
    %176 = arith.mulf %175, %175 : vector<8x128xf32>
    %177 = arith.addf %173, %176 : vector<8x128xf32>
    %cst_63 = arith.constant 1.000000e+00 : f32
    %178 = vector.broadcast %cst_63 : f32 to vector<8x128xf32>
    %179 = arith.mulf %178, %177 : vector<8x128xf32>
    %180 = arith.addf %162, %179 : vector<8x128xf32>
    %c5 = arith.constant 5 : index
    %c0_64 = arith.constant 0 : index
    %c0_65 = arith.constant 0 : index
    %181 = vector.load %arg2[%c5, %c0_64, %c0_65] : memref<9x8x128xbf16, #tpu.memory_space<vmem>>, vector<1x8x128xbf16>
    %182 = vector.shape_cast %181 : vector<1x8x128xbf16> to vector<8x128xbf16>
    %183 = arith.extf %182 : vector<8x128xbf16> to vector<8x128xf32>
    %184 = arith.mulf %150, %183 : vector<8x128xf32>
    %c6 = arith.constant 6 : index
    %c0_66 = arith.constant 0 : index
    %c0_67 = arith.constant 0 : index
    %185 = vector.load %arg2[%c6, %c0_66, %c0_67] : memref<9x8x128xbf16, #tpu.memory_space<vmem>>, vector<1x8x128xbf16>
    %186 = vector.shape_cast %185 : vector<1x8x128xbf16> to vector<8x128xbf16>
    %187 = arith.extf %186 : vector<8x128xbf16> to vector<8x128xf32>
    %188 = arith.mulf %150, %187 : vector<8x128xf32>
    %c7 = arith.constant 7 : index
    %c0_68 = arith.constant 0 : index
    %c0_69 = arith.constant 0 : index
    %189 = vector.load %arg2[%c7, %c0_68, %c0_69] : memref<9x8x128xbf16, #tpu.memory_space<vmem>>, vector<1x8x128xbf16>
    %190 = vector.shape_cast %189 : vector<1x8x128xbf16> to vector<8x128xbf16>
    %191 = arith.extf %190 : vector<8x128xbf16> to vector<8x128xf32>
    %192 = arith.mulf %150, %191 : vector<8x128xf32>
    %c8 = arith.constant 8 : index
    %c0_70 = arith.constant 0 : index
    %c0_71 = arith.constant 0 : index
    %193 = vector.load %arg2[%c8, %c0_70, %c0_71] : memref<9x8x128xbf16, #tpu.memory_space<vmem>>, vector<1x8x128xbf16>
    %194 = vector.shape_cast %193 : vector<1x8x128xbf16> to vector<8x128xbf16>
    %195 = arith.extf %194 : vector<8x128xbf16> to vector<8x128xf32>
    %196 = arith.mulf %150, %195 : vector<8x128xf32>
    %197 = arith.maximumf %184, %188 : vector<8x128xf32>
    %198 = arith.maximumf %197, %192 : vector<8x128xf32>
    %199 = arith.maximumf %198, %196 : vector<8x128xf32>
    %200 = arith.subf %184, %199 : vector<8x128xf32>
    %201 = math.exp %200 : vector<8x128xf32>
    %202 = arith.subf %188, %199 : vector<8x128xf32>
    %203 = math.exp %202 : vector<8x128xf32>
    %204 = arith.subf %192, %199 : vector<8x128xf32>
    %205 = math.exp %204 : vector<8x128xf32>
    %206 = arith.subf %196, %199 : vector<8x128xf32>
    %207 = math.exp %206 : vector<8x128xf32>
    %208 = arith.addf %201, %203 : vector<8x128xf32>
    %209 = arith.addf %208, %205 : vector<8x128xf32>
    %210 = arith.addf %209, %207 : vector<8x128xf32>
    %cst_72 = arith.constant 1.000000e+00 : f32
    %211 = vector.broadcast %cst_72 : f32 to vector<8x128xf32>
    %212 = arith.divf %211, %210 : vector<8x128xf32>
    %213 = arith.mulf %201, %212 : vector<8x128xf32>
    %c5_73 = arith.constant 5 : index
    %c0_74 = arith.constant 0 : index
    %c0_75 = arith.constant 0 : index
    %214 = vector.load %arg3[%c5_73, %c0_74, %c0_75] : memref<9x8x128xbf16, #tpu.memory_space<vmem>>, vector<1x8x128xbf16>
    %215 = vector.shape_cast %214 : vector<1x8x128xbf16> to vector<8x128xbf16>
    %216 = arith.extf %215 : vector<8x128xbf16> to vector<8x128xf32>
    %217 = arith.subf %213, %216 : vector<8x128xf32>
    %218 = arith.mulf %217, %217 : vector<8x128xf32>
    %219 = arith.addf %180, %218 : vector<8x128xf32>
    %220 = arith.mulf %203, %212 : vector<8x128xf32>
    %c6_76 = arith.constant 6 : index
    %c0_77 = arith.constant 0 : index
    %c0_78 = arith.constant 0 : index
    %221 = vector.load %arg3[%c6_76, %c0_77, %c0_78] : memref<9x8x128xbf16, #tpu.memory_space<vmem>>, vector<1x8x128xbf16>
    %222 = vector.shape_cast %221 : vector<1x8x128xbf16> to vector<8x128xbf16>
    %223 = arith.extf %222 : vector<8x128xbf16> to vector<8x128xf32>
    %224 = arith.subf %220, %223 : vector<8x128xf32>
    %225 = arith.mulf %224, %224 : vector<8x128xf32>
    %226 = arith.addf %219, %225 : vector<8x128xf32>
    %227 = arith.mulf %205, %212 : vector<8x128xf32>
    %c7_79 = arith.constant 7 : index
    %c0_80 = arith.constant 0 : index
    %c0_81 = arith.constant 0 : index
    %228 = vector.load %arg3[%c7_79, %c0_80, %c0_81] : memref<9x8x128xbf16, #tpu.memory_space<vmem>>, vector<1x8x128xbf16>
    %229 = vector.shape_cast %228 : vector<1x8x128xbf16> to vector<8x128xbf16>
    %230 = arith.extf %229 : vector<8x128xbf16> to vector<8x128xf32>
    %231 = arith.subf %227, %230 : vector<8x128xf32>
    %232 = arith.mulf %231, %231 : vector<8x128xf32>
    %233 = arith.addf %226, %232 : vector<8x128xf32>
    %234 = arith.mulf %207, %212 : vector<8x128xf32>
    %c8_82 = arith.constant 8 : index
    %c0_83 = arith.constant 0 : index
    %c0_84 = arith.constant 0 : index
    %235 = vector.load %arg3[%c8_82, %c0_83, %c0_84] : memref<9x8x128xbf16, #tpu.memory_space<vmem>>, vector<1x8x128xbf16>
    %236 = vector.shape_cast %235 : vector<1x8x128xbf16> to vector<8x128xbf16>
    %237 = arith.extf %236 : vector<8x128xbf16> to vector<8x128xf32>
    %238 = arith.subf %234, %237 : vector<8x128xf32>
    %239 = arith.mulf %238, %238 : vector<8x128xf32>
    %240 = arith.addf %233, %239 : vector<8x128xf32>
    %cst_85 = arith.constant 0.000000e+00 : f32
    %241 = vector.broadcast %cst_85 : f32 to vector<8x128xf32>
    %242 = arith.select %47, %240, %241 : vector<8x128xi1>, vector<8x128xf32>
    %243 = vector.shape_cast %242 : vector<8x128xf32> to vector<1x8x128xf32>
    %cst_86 = arith.constant dense<0.000000e+00> : vector<1xf32>
    %244 = vector.multi_reduction <add>, %243, %cst_86 [1, 2] : vector<1x8x128xf32> to vector<1xf32>
    %245 = vector.shape_cast %244 : vector<1xf32> to vector<1x1x1xf32>
    %246 = vector.extract %245[0, 0, 0] : f32 from vector<1x1x1xf32>
    %247 = tpu.iota {dimensions = array<i32: 0>} : vector<8x128xi32>
    %248 = tpu.iota {dimensions = array<i32: 1>} : vector<8x128xi32>
    %c0_i32_87 = arith.constant 0 : i32
    %249 = vector.broadcast %c0_i32_87 : i32 to vector<8x128xi32>
    %250 = arith.cmpi eq, %247, %249 : vector<8x128xi32>
    %c0_i32_88 = arith.constant 0 : i32
    %251 = vector.broadcast %c0_i32_88 : i32 to vector<8x128xi32>
    %252 = arith.cmpi eq, %248, %251 : vector<8x128xi32>
    %253 = arith.andi %250, %252 : vector<8x128xi1>
    %cst_89 = arith.constant 0.000000e+00 : f32
    %254 = vector.broadcast %246 : f32 to vector<8x128xf32>
    %255 = vector.broadcast %cst_89 : f32 to vector<8x128xf32>
    %256 = arith.select %253, %254, %255 : vector<8x128xi1>, vector<8x128xf32>
    %c0_90 = arith.constant 0 : index
    %c0_91 = arith.constant 0 : index
    %257 = vector.load %arg5[%c0_90, %c0_91] : memref<8x128xf32, #tpu.memory_space<vmem>>, vector<8x128xf32>
    tpu.vector_store %arg5[%c0_90, %c0_91], %256 {strides = array<i32>} : memref<8x128xf32, #tpu.memory_space<vmem>>, vector<8x128xf32>,
    %c0_92 = arith.constant 0 : index
    %258 = memref.load %arg1[%c0_92] : memref<1xi32, #tpu.memory_space<smem>>
    %c12800_i32 = arith.constant 12800 : i32
    %259 = arith.cmpi slt, %258, %c12800_i32 : i32
    %260 = arith.extui %259 : i1 to i32
    %c0_i32_93 = arith.constant 0 : i32
    %261 = arith.cmpi ne, %260, %c0_i32_93 : i32
    scf.if %261 {
      %cst_94 = arith.constant 1.000000e+00 : f32
      %262 = vector.broadcast %cst_94 : f32 to vector<8x128xf32>
      %263 = arith.subf %262, %150 : vector<8x128xf32>
      %cst_95 = arith.constant 6.250000e-02 : f32
      %264 = vector.broadcast %cst_95 : f32 to vector<8x128xf32>
      %265 = arith.subf %57, %264 : vector<8x128xf32>
      %266 = arith.mulf %265, %265 : vector<8x128xf32>
      %cst_96 = arith.constant 6.250000e-02 : f32
      %267 = vector.broadcast %cst_96 : f32 to vector<8x128xf32>
      %268 = arith.subf %67, %267 : vector<8x128xf32>
      %269 = arith.mulf %268, %268 : vector<8x128xf32>
      %270 = arith.addf %266, %269 : vector<8x128xf32>
      %271 = vector.broadcast %34 : vector<8x1xf32> to vector<8x128xf32>
      %272 = arith.subf %73, %271 : vector<8x128xf32>
      %273 = arith.mulf %272, %272 : vector<8x128xf32>
      %274 = arith.addf %270, %273 : vector<8x128xf32>
      %275 = vector.broadcast %37 : vector<8x1xf32> to vector<8x128xf32>
      %276 = arith.subf %79, %275 : vector<8x128xf32>
      %277 = arith.mulf %276, %276 : vector<8x128xf32>
      %278 = arith.addf %274, %277 : vector<8x128xf32>
      %279 = arith.mulf %263, %278 : vector<8x128xf32>
      %cst_97 = arith.constant 0.000000e+00 : f32
      %280 = vector.broadcast %cst_97 : f32 to vector<8x128xf32>
      %281 = arith.select %47, %279, %280 : vector<8x128xi1>, vector<8x128xf32>
      %282 = vector.shape_cast %281 : vector<8x128xf32> to vector<1x8x128xf32>
      %cst_98 = arith.constant dense<0.000000e+00> : vector<1xf32>
      %283 = vector.multi_reduction <add>, %282, %cst_98 [1, 2] : vector<1x8x128xf32> to vector<1xf32>
      %284 = vector.shape_cast %283 : vector<1xf32> to vector<1x1x1xf32>
      %285 = vector.extract %284[0, 0, 0] : f32 from vector<1x1x1xf32>
      %cst_99 = arith.constant 0.00999999977 : f32
      %286 = arith.mulf %cst_99, %285 : f32
      %c0_100 = arith.constant 0 : index
      %c0_101 = arith.constant 0 : index
      %287 = vector.load %arg5[%c0_100, %c0_101] : memref<8x128xf32, #tpu.memory_space<vmem>>, vector<8x128xf32>
      %cst_102 = arith.constant 0.000000e+00 : f32
      %288 = vector.broadcast %286 : f32 to vector<8x128xf32>
      %289 = vector.broadcast %cst_102 : f32 to vector<8x128xf32>
      %290 = arith.select %253, %288, %289 : vector<8x128xi1>, vector<8x128xf32>
      %291 = arith.addf %287, %290 : vector<8x128xf32>
      %c0_103 = arith.constant 0 : index
      %c0_104 = arith.constant 0 : index
      %292 = vector.load %arg5[%c0_103, %c0_104] : memref<8x128xf32, #tpu.memory_space<vmem>>, vector<8x128xf32>
      tpu.vector_store %arg5[%c0_103, %c0_104], %291 {strides = array<i32>} : memref<8x128xf32, #tpu.memory_space<vmem>>, vector<8x128xf32>,
    } else {
    }
    return
  }
  func.func @transform_0(%arg0: i32, %arg1: memref<1xi32, #tpu.memory_space<smem>>) -> (i32, i32, i32) {
    %c0_i32 = arith.constant 0 : i32
    %c0_i32_0 = arith.constant 0 : i32
    %c0_i32_1 = arith.constant 0 : i32
    return %c0_i32, %arg0, %c0_i32_0 : i32, i32, i32
  }
  func.func @transform_1(%arg0: i32, %arg1: memref<1xi32, #tpu.memory_space<smem>>) -> (i32, i32, i32) {
    %c0_i32 = arith.constant 0 : i32
    %c0_i32_0 = arith.constant 0 : i32
    %c0_i32_1 = arith.constant 0 : i32
    return %c0_i32, %arg0, %c0_i32_0 : i32, i32, i32
  }
  func.func @transform_2(%arg0: i32, %arg1: memref<1xi32, #tpu.memory_space<smem>>) -> (i32, i32) {
    %c0_i32 = arith.constant 0 : i32
    %c0_i32_0 = arith.constant 0 : i32
    %c0_i32_1 = arith.constant 0 : i32
    return %c0_i32, %c0_i32_0 : i32, i32
  }
  func.func @transform_3(%arg0: i32, %arg1: memref<1xi32, #tpu.memory_space<smem>>) -> (i32, i32) {
    %c0_i32 = arith.constant 0 : i32
    %c0_i32_0 = arith.constant 0 : i32
    return %arg0, %c0_i32 : i32, i32
  }
}

</mosaic_0001>

<bundles_post_ra>
// kernel: yolov2_loss.1
= control target key start
LH: loop header
LB: loop body
LE: loop exit
PB: predicated region body
PF: predicated region fallthrough
CT: control target
= control target key end

     0   :  { %10 = vsyncpa [#allocation5], 0  ;;  %s542_s0 = inlined_call_operand.<no memory space> [shape: s32[1], index: 0, kind: input, shape index: {}]   ;;  %s543_s1 = inlined_call_operand.vmem [shape: bf16[9,8,128], index: 1, kind: input, shape index: {}]   ;;  %s544_s2 = inlined_call_operand.vmem [shape: bf16[9,8,128], index: 2, kind: input, shape index: {}]   ;;  %s545_s3 = inlined_call_operand.vmem [shape: f32[2,2], index: 3, kind: input, shape index: {}]   ;;  %s546_s4 = inlined_call_operand.vmem [shape: f32[8,128], index: 4, kind: output, shape index: {}]  }
   0x1   :  { %s21_s17 = sshll.u32 %s545_s3, 4  ;;  %s22_s17 = int_to_ptr.vmem [resolvable:$true] %s21_s17 }
   0x2   :  { %s353_s18 = scalar_lea.vmem %s22_s17, 32  ;;  %p358_p1 = scmp.lt.s32.totalorder %s22_s17, %s22_s17 }
   0x3   :  { %p354_p0 = scmp.ne.s32.totalorder %s22_s17, %s353_s18  ;;  %p359_p2 = scmp.lt.s32.totalorder %s353_s18, %s353_s18 }
   0x5   :  { %p360_p3 = por %p359_p2, %p358_p1 }
   0x7   :  { %p361_p4 = pnand %p360_p3, %p354_p0 }
   0x9   :  { %364 = shalt.err (!%p361_p4)
}
   0xa   :  { %s367_s19 = smov [#allocation4]  }
   0xb   :  { %24 = dma.vmem_to_smem %s22_s17, 32, %s367_s19, [#allocation5]  }
   0xc   :  { %365 = dma.done.wait [#allocation5], 32  }
   0xd   :  { %366 = vsyncadd [#allocation5], 4294967264 }
   0xe   :  { %28 = sfence }
   0xf   :  { %v29_v0 = vlaneseq  ;;  %v65_v1 = vld [vmem:[%s543_s1] sm:$0xff]   ;;  %v291_v2 = vld [vmem:[%s543_s1 + $0x8] sm:$0xff]   ;;  %s406_s23 = sld [smem:[#allocation4]]  ;;  %s408_s24 = sld [smem:[#allocation4 + $0x1]]  ;;  %v413_v11 = vld [vmem:[%s544_s2 + $0x10] sm:$0xff]   ;;  %v368_v22 = vmov 0.0  }
  0x10   :  { %v66_v3 = vunpack.c.l.bf16 %v65_v1  ;;  %v73_v4 = vunpack.c.h.bf16 %v65_v1  ;;  %v80_v5 = vunpack.c.l.bf16 %v291_v2  ;;  %v86_v6 = vunpack.c.h.bf16 %v291_v2  ;;  %s415_s27 = sld [smem:[#allocation4 + $0x80]]  ;;  %s418_s28 = sld [smem:[#allocation4 + $0x81]]  ;;  %v293_v14 = vld [vmem:[%s543_s1 + $0x10] sm:$0xff]   ;;  %v324_v16 = vld [vmem:[%s543_s1 + $0x18] sm:$0xff]   ;;  %v323_v17 = vld [vmem:[%s544_s2 + $0x8] sm:$0xff]  }
  0x11   :  { %v404_v7 = vshrl.u32 %v29_v0, 7  ;;  %v110_v15 = vunpack.c.l.bf16 %v413_v11  ;;  %v170_v18 = vunpack.c.h.bf16 %v293_v14  ;;  %v321_v24 = vunpack.c.l.bf16 %v324_v16  ;;  %v303_v26 = vld [vmem:[%s543_s1 + $0x20] sm:$0xf]  ;;  %p308_p5 = scmp.ge.s32.totalorder %s542_s0, 12800 }
  0x12   :  { %v67_v8 = vmul.f32 0.5, %v66_v3  ;;  %v74_v9 = vmul.f32 0.5, %v73_v4  ;;  %v81_v10 = vmul.f32 1.442695, %v80_v5  ;;  %v87_v12 = vmul.f32 1.442695, %v86_v6 }
  0x13   :  { %v38_v13 = vand.u32 1, %v404_v7  ;;  %vm139_vm0 = vcmp.gt.f32.partialorder %v110_v15, 0.0  ;;  %v322_v25 = vunpack.c.h.bf16 %v324_v16  ;;  %v442_v27 = vunpack.c.l.bf16 %v323_v17  ;;  %v312_v36 = vld [vmem:[%s544_s2] sm:$0xff]  }
  0x14   :  { %331 = vtanh.f32 %v67_v8  ;;  %v437_v23 = vsel %vm139_vm0, 1.0, %v368_v22  ;;  %v444_v28 = vunpack.c.h.bf16 %v323_v17  ;;  %v182_v38 = vunpack.c.l.bf16 %v303_v26 }
  0x15   :  { %333 = vtanh.f32 %v74_v9  ;;  %vm430_vm1 = vcmp.eq.s32.totalorder %v38_v13, 0  ;;  %v48_v20 = vstv %s406_s23  ;;  %v51_v21 = vstv %s408_s24 }
  0x16   :  { %335 = vpow2.f32 %v81_v10  ;;  %v171_v29 = vmul.f32 %v437_v23, %v170_v18  ;;  %v49_v30 = vsel %vm430_vm1, %v48_v20, 0.0  ;;  %vm53_vm2 = vcmp.eq.s32.totalorder %v38_v13, 1 }
  0x17   :  { %337 = vpow2.f32 %v87_v12  ;;  %v55_v31 = vstv %s415_s27  ;;  %v175_v32 = vmul.f32 %v321_v24, %v437_v23  ;;  %v52_v34 = vsel %vm430_vm1, %v51_v21, 0.0 }
  0x18   :  { %v58_v35 = vstv %s418_s28  ;;  %v179_v37 = vmul.f32 %v322_v25, %v437_v23  ;;  %v458_v41 = vsel %vm53_vm2, %v55_v31, %v49_v30  ;;  %v313_v44 = vunpack.c.l.bf16 %v312_v36 }
  0x19   :  { %v184_v40 = vmax.f32 %v171_v29, %v175_v32  ;;  %v460_v43 = vsel %vm53_vm2, %v58_v35, %v52_v34  ;;  %v314_v45 = vunpack.c.h.bf16 %v312_v36  ;;  %v113_v46 = vmul.f32 0.5, %v442_v27 }
  0x1a   :  { %v123_v49 = vmul.f32 0.5, %v444_v28  ;;  %v183_v50 = vmul.f32 %v437_v23, %v182_v38  ;;  %v92_v57 = vunpack.c.l.bf16 %v293_v14  ;;  %v133_v10 = vmul.f32 %v444_v28, %v442_v27 }
  0x1b   :  { %v185_v51 = vmax.f32 %v184_v40, %v179_v37  ;;  %v114_v59 = vadd.f32 %v313_v44, %v113_v46  ;;  %v117_v60 = vsub.f32 %v313_v44, %v113_v46  ;;  %vm63_vm5 = vcmp.lt.s32.totalorder %v404_v7, 4 }
  0x1c   :  { %v124_v62 = vadd.f32 %v314_v45, %v123_v49  ;;  %v127_v63 = vsub.f32 %v314_v45, %v123_v49  ;;  %v93_v6 = vmul.f32 0.5, %v92_v57  ;;  %vm242_vm7 = vcmp.eq.s32.totalorder %v404_v7, 0 }
  0x1d   :  { %v186_v1 = vmax.f32 %v185_v51, %v183_v50 }
  0x1e   :  { %v332_v33 = vpop.eup %331  ;;  %339 = vtanh.f32 %v93_v6 }
  0x1f   :  { %v69_v39 = vadd.f32 1.0, %v332_v33  ;;  %v334_v42 = vpop.eup %333  ;;  %v187_v15 = vsub.f32 %v171_v29, %v186_v1  ;;  %v190_v17 = vsub.f32 %v175_v32, %v186_v1  ;;  %v193_v20 = vsub.f32 %v179_v37, %v186_v1 }
  0x20   :  { %v336_v47 = vpop.eup %335  ;;  %v76_v48 = vadd.f32 1.0, %v334_v42  ;;  %v196_v25 = vsub.f32 %v183_v50, %v186_v1 }
  0x21   :  { %v338_v52 = vpop.eup %337  ;;  %v465_v53 = vmul.f32 0.5, %v69_v39  ;;  %v468_v54 = vmul.f32 %v336_v47, %v458_v41  ;;  %v188_v19 = vmul.f32 1.442695, %v187_v15  ;;  %v191_v24 = vmul.f32 1.442695, %v190_v17 }
  0x22   :  { %v470_v55 = vmul.f32 0.5, %v76_v48  ;;  %v473_v56 = vmul.f32 %v338_v52, %v460_v43  ;;  %v194_v31 = vmul.f32 1.442695, %v193_v20  ;;  %v197_v33 = vmul.f32 1.442695, %v196_v25 }
  0x23   :  { %v111_v58 = vmul.f32 0.5, %v468_v54  ;;  %341 = vpow2.f32 %v188_v19  ;;  %v152_v32 = vmul.f32 %v437_v23, %v465_v53  ;;  %v159_v46 = vmul.f32 %v437_v23, %v468_v54 }
  0x24   :  { %v121_v61 = vmul.f32 0.5, %v473_v56  ;;  %v132_v14 = vmul.f32 %v473_v56, %v468_v54  ;;  %343 = vpow2.f32 %v191_v24  ;;  %v155_v36 = vmul.f32 %v437_v23, %v470_v55 }
  0x25   :  { %v112_v2 = vadd.f32 %v111_v58, %v465_v53  ;;  %v116_v3 = vsub.f32 %v465_v53, %v111_v58  ;;  %345 = vpow2.f32 %v194_v31  ;;  %v153_v40 = vsub.f32 %v152_v32, %v313_v44 }
  0x26   :  { %v122_v4 = vadd.f32 %v121_v61, %v470_v55  ;;  %v126_v5 = vsub.f32 %v470_v55, %v121_v61  ;;  %v134_v30 = vadd.f32 %v133_v10, %v132_v14  ;;  %347 = vpow2.f32 %v197_v33 }
  0x27   :  { %v115_v8 = vmin.f32 %v112_v2, %v114_v59  ;;  %v118_v9 = vmax.f32 %v116_v3, %v117_v60  ;;  %v156_v42 = vsub.f32 %v155_v36, %v314_v45  ;;  %v154_v52 = vmul.f32 %v153_v40, %v153_v40 }
  0x28   :  { %v125_v12 = vmin.f32 %v122_v4, %v124_v62  ;;  %v128_v13 = vmax.f32 %v126_v5, %v127_v63  ;;  %v340_v37 = vpop.eup %339  ;;  %v160_v58 = vsub.f32 %v159_v46, %v442_v27  ;;  %v163_v59 = vmul.f32 %v437_v23, %v473_v56 }
  0x29   :  { %v119_v16 = vsub.f32 %v115_v8, %v118_v9  ;;  %v95_v50 = vadd.f32 1.0, %v340_v37  ;;  %v157_v57 = vmul.f32 %v156_v42, %v156_v42  ;;  %v305_v8 = vld [vmem:[%s544_s2 + $0x18] sm:$0xff]   ;;  %v61_v33 = vand.u32 127, %v29_v0 }
  0x2a   :  { %v129_v18 = vsub.f32 %v125_v12, %v128_v13  ;;  %v161_v63 = vmul.f32 %v160_v58, %v160_v58  ;;  %v164_v1 = vsub.f32 %v163_v59, %v444_v28  ;;  %v307_v12 = vld [vmem:[%s544_s2 + $0x20] sm:$0xf]  ;;  %v207_v28 = vunpack.c.h.bf16 %v413_v11 }
  0x2b   :  { %v120_v21 = vmax.f32 %v119_v16, 0.0  ;;  %v96_v61 = vmul.f32 0.5, %v95_v50  ;;  %v158_v45 = vadd.f32 %v157_v57, %v154_v52  ;;  %v221_v15 = vunpack.c.h.bf16 %v305_v8 }
  0x2c   :  { %v130_v26 = vmax.f32 %v129_v18, 0.0  ;;  %v165_v27 = vmul.f32 %v164_v1, %v164_v1  ;;  %v228_v17 = vunpack.c.l.bf16 %v307_v12  ;;  %vm62_vm4 = vcmp.lt.s32.totalorder %v61_v33, 64 }
  0x2d   :  { %v342_v38 = vpop.eup %341  ;;  %v162_v6 = vadd.f32 %v161_v63, %v158_v45  ;;  %vm506_vm6 = vmand %vm62_vm4, %vm63_vm5  ;;  %vm243_vm8 = vcmp.eq.s32.totalorder %v61_v33, 0  ;;  %v309_v7 = vadd.f32 (!%p308_p5), -0.0625, %v465_v53  ;;  %v310_v59 = vadd.f32 (!%p308_p5), -0.0625, %v470_v55 }
  0x2e   :  { %v131_v34 = vmul.f32 %v130_v26, %v120_v21  ;;  %v344_v39 = vpop.eup %343  ;;  %vm513_vm9 = vmand %vm242_vm7, %vm243_vm8 }
  0x2f   :  { %v346_v47 = vpop.eup %345  ;;  %v199_v48 = vadd.f32 %v344_v39, %v342_v38  ;;  %v166_v14 = vadd.f32 %v165_v27, %v162_v6 }
  0x30   :  { %v135_v35 = vsub.f32 %v134_v30, %v131_v34  ;;  %v348_v49 = vpop.eup %347 }
  0x31   :  { %v200_v51 = vadd.f32 %v346_v47, %v199_v48 }
  0x32   :  { %v136_v29 = vadd.f32 1e-05, %v135_v35 }
  0x33   :  { %v201_v60 = vadd.f32 %v348_v49, %v200_v51 }
  0x34   :  { %349 = vrcp.f32 %v136_v29 }
  0x35   :  { %351 = vrcp.f32 %v201_v60  ;;  %v259_v60 = vsub.f32 (!%p308_p5), %v468_v54, %v458_v41 }
  0x37   :  { %v260_v45 = vmul.f32 (!%p308_p5), %v259_v60, %v259_v60 }
  0x3e   :  { %v350_v62 = vpop.eup %349 }
  0x3f   :  { %v138_v44 = vmul.f32 %v350_v62, %v131_v34  ;;  %v352_v16 = vpop.eup %351  ;;  %v255_v62 = vmul.f32 (!%p308_p5), %v309_v7, %v309_v7 }
  0x40   :  { %v204_v19 = vmul.f32 %v352_v16, %v342_v38  ;;  %v211_v20 = vmul.f32 %v352_v16, %v344_v39  ;;  %v218_v21 = vmul.f32 %v352_v16, %v346_v47  ;;  %v225_v24 = vmul.f32 %v352_v16, %v348_v49 }
  0x41   :  { %vm142_vm3 = vcmp.lt.f32.partialorder %v138_v44, 0.6  ;;  %v147_v2 = vsub.f32 %v96_v61, %v138_v44  ;;  %v257_v44 = vmul.f32 (!%p308_p5), %v310_v59, %v310_v59 }
  0x42   :  { %v299_v3 = vsel %vm142_vm3, 1.0, %v368_v22  ;;  %v214_v22 = vunpack.c.l.bf16 %v305_v8  ;;  %v208_v26 = vsub.f32 %v204_v19, %v207_v28  ;;  %v222_v31 = vsub.f32 %v218_v21, %v221_v15 }
  0x43   :  { %v145_v4 = vmul.f32 %v299_v3, %v96_v61  ;;  %v148_v5 = vmul.f32 %v147_v2, %v147_v2  ;;  %v229_v11 = vsub.f32 %v225_v24, %v228_v17  ;;  %v262_v61 = vsub.f32 (!%p308_p5), %v473_v56, %v460_v43 }
  0x44   :  { %v215_v30 = vsub.f32 %v211_v20, %v214_v22  ;;  %v209_v34 = vmul.f32 %v208_v26, %v208_v26  ;;  %v223_v32 = vmul.f32 %v222_v31, %v222_v31  ;;  %v258_v63 = vadd.f32 (!%p308_p5), %v257_v44, %v255_v62 }
  0x45   :  { %v146_v9 = vmul.f32 %v145_v4, %v145_v4  ;;  %v149_v10 = vmul.f32 %v437_v23, %v148_v5  ;;  %v230_v37 = vmul.f32 %v229_v11, %v229_v11  ;;  %v263_v1 = vmul.f32 (!%p308_p5), %v262_v61, %v262_v61 }
  0x46   :  { %v216_v35 = vmul.f32 %v215_v30, %v215_v30  ;;  %v253_v2 = vsub.f32 (!%p308_p5), 1.0, %v437_v23  ;;  %v261_v3 = vadd.f32 (!%p308_p5), %v260_v45, %v258_v63 }
  0x47   :  { %v150_v13 = vmul.f32 5.0, %v149_v10 }
  0x48   :  { %v264_v4 = vadd.f32 (!%p308_p5), %v263_v1, %v261_v3 }
  0x49   :  { %v151_v18 = vadd.f32 %v150_v13, %v146_v9 }
  0x4a   :  { %v265_v5 = vmul.f32 (!%p308_p5), %v264_v4, %v253_v2 }
  0x4b   :  { %v167_v25 = vadd.f32 %v166_v14, %v151_v18 }
  0x4c   :  { %v266_v53 = vsel (!%p308_p5), %vm506_vm6, %v265_v5, 0.0 }
  0x4d   :  { %v210_v29 = vadd.f32 %v209_v34, %v167_v25 }
  0x4f   :  { %v217_v36 = vadd.f32 %v216_v35, %v210_v29 }
  0x51   :  { %v224_v38 = vadd.f32 %v223_v32, %v217_v36 }
  0x53   :  { %v231_v40 = vadd.f32 %v230_v37, %v224_v38 }
  0x55   :  { %v232_v42 = vsel %vm506_vm6, %v231_v40, 0.0 }
  0x56   :  { %233 = vadd.xlane.f32.xlu0 %v232_v42 }
  0x5a   :  { %267 = vadd.xlane.f32.xlu0 (!%p308_p5), %v266_v53 }
  0xe3   :  { %v234_v0 = vpop.xlane.xlu0 %233 }
  0xe4   :  { %v235_v46 = vrot.slane %v234_v0, 4 }
  0xe6   :  { %v236_v47 = vadd.f32 %v235_v46, %v234_v0 }
  0xe7   :  { %v268_v55 = vpop.xlane.xlu0 (!%p308_p5), %267 }
  0xe8   :  { %v237_v48 = vrot.slane %v236_v47, 2  ;;  %v269_v6 = vrot.slane (!%p308_p5), %v268_v55, 4 }
  0xea   :  { %v238_v49 = vadd.f32 %v237_v48, %v236_v47  ;;  %v270_v41 = vadd.f32 (!%p308_p5), %v269_v6, %v268_v55 }
  0xec   :  { %v239_v50 = vrot.slane %v238_v49, 1  ;;  %v271_v54 = vrot.slane (!%p308_p5), %v270_v41, 2 }
  0xee   :  { %v240_v51 = vadd.f32 %v239_v50, %v238_v49  ;;  %v272_v27 = vadd.f32 (!%p308_p5), %v271_v54, %v270_v41 }
  0xf0   :  { %325 = vpush %v240_v51  ;;  %v273_v43 = vrot.slane (!%p308_p5), %v272_v27, 1 }
  0xf2   :  { %v274_v56 = vadd.f32 (!%p308_p5), %v273_v43, %v272_v27 }
  0xf4   :  { %327 = vpush (!%p308_p5), %v274_v56 }
 0x11e   :  { %252 = sbr.rel (%p308_p5) target bundleno = 303 (0x12f), region = 21 }
 0x121   :  { %s326_s2 = spop %325 }
 0x122   :  { %v245_v57 = vstv %s326_s2 }
 0x123   :  { %v246_v58 = vsel %vm513_vm9, %v245_v57, 0.0 }
 0x124   :  { %247 = vst [vmem:[%s546_s4] sm:$0xff] %v246_v58 }
 0x125   :  { %s328_s0 = spop %327 }
 0x126   :  { %s276_s20 = smul.f32 0.01, %s328_s0 }
 0x128   :  { %v278_v8 = vstv %s276_s20 }
 0x129   :  { %v279_v9 = vsel %vm513_vm9, %v278_v8, 0.0 }
 0x12b   :  { %v277_v23 = vld [vmem:[%s546_s4] sm:$0xff] }
 0x12c   :  { %v280_v10 = vadd.f32 %v279_v9, %v277_v23 }
 0x12e   :  { %281 = vst [vmem:[%s546_s4] sm:$0xff] %v280_v10 }
 0x12f PF:  { %286 = vsyncpa [#allocation5], 1 }

</bundles_post_ra>
